<compile_context>
chip_gen: v7x
topology: tpu7x:2x2x1
jax: 0.10.0
libtpu: 0.0.40
codegen_flags: <defaults>
</compile_context>

<pallas_src>
import functools

import jax
import jax.numpy as jnp
from jax.experimental import pallas as pl
from jax.experimental.pallas import tpu as pltpu


def _dma_gather_kernel(perm_ref, x_hbm, o_hbm, sems, *, C, G):
    """Issue G HBM->HBM channel-gather DMAs, then wait for all of them."""
    n = pl.program_id(0)           # batch index
    g = pl.program_id(1)           # channel-group index
    base = g * G

    copies = []
    for j in range(G):             # static unroll: G overlapping DMAs in flight
        c = base + j
        src_row = n * C + perm_ref[c]   # gather source channel (from SMEM)
        dst_row = n * C + c             # contiguous destination channel
        cp = pltpu.make_async_copy(x_hbm.at[src_row], o_hbm.at[dst_row],
                                   sems.at[j])
        cp.start()
        copies.append(cp)
    for cp in copies:
        cp.wait()


def _choose_group(C, max_group=16):
    """Largest divisor of C up to max_group: channels gathered per grid step."""
    best = 1
    for g in range(1, min(C, max_group) + 1):
        if C % g == 0:
            best = g
    return best


@jax.jit
def permutation_forward(x, perm):
    """out = x[:, perm] for x of shape (N, C, H, W)."""
    N, C, H, W = x.shape
    HW = H * W

    # Lane-friendly 2-D slab per channel: (S, 128) when possible, else (1, HW).
    if HW % 128 == 0:
        S, L = HW // 128, 128
    else:
        S, L = 1, HW

    G = _choose_group(C)

    # Free, contiguous reshape: channel c of batch n is row n*C + c.
    x_flat = x.reshape(N * C, S, L)

    out_flat = pl.pallas_call(
        functools.partial(_dma_gather_kernel, C=C, G=G),
        out_shape=jax.ShapeDtypeStruct((N * C, S, L), x.dtype),
        grid_spec=pltpu.PrefetchScalarGridSpec(
            num_scalar_prefetch=1,                       # perm lives in SMEM
            grid=(N, C // G),
            in_specs=[pl.BlockSpec(memory_space=pl.ANY)],   # raw HBM input
            out_specs=pl.BlockSpec(memory_space=pl.ANY),    # raw HBM output
            scratch_shapes=[pltpu.SemaphoreType.DMA((G,))],
        ),
        compiler_params=pltpu.CompilerParams(
            dimension_semantics=("parallel", "parallel"),   # shard over v7x TCs
            has_side_effects=True,                          # output written via DMA
        ),
    )(perm.astype(jnp.int32), x_flat)

    return out_flat.reshape(N, C, H, W)


if __name__ == "__main__":
    key = jax.random.PRNGKey(0)
    k_x, k_perm = jax.random.split(key)

    N, C, H, W = 2, 4, 16, 16

    # Deterministic "parameters": a fixed random permutation of the channels.
    perm = jax.random.permutation(k_perm, jnp.arange(C, dtype=jnp.int32))
    x = jax.random.normal(k_x, (N, C, H, W), dtype=jnp.float32)

    out = jax.block_until_ready(permutation_forward(x, perm))

    # Reference: plain JAX gather along the channel axis.
    ref = x[:, perm]
    assert out.shape == x.shape
    assert out.dtype == x.dtype
    assert jnp.array_equal(out, ref), "Pallas permutation mismatch vs reference"

    print("KERNEL_OK")
</pallas_src>

<mosaic_0001>
module attributes {stable_mosaic.version = 11 : i64} {
  func.func @_dma_gather_kernel(%arg0: i32, %arg1: i32, %arg2: memref<4xi32, #tpu.memory_space<smem>>, %arg3: memref<8x2x128xf32, #tpu.memory_space<any>>, %arg4: memref<8x2x128xf32, #tpu.memory_space<any>>, %arg5: memref<4x!tpu.dma_semaphore, #tpu.memory_space<semaphore_mem>>) attributes {dimension_semantics = [#tpu.dimension_semantics<parallel>, #tpu.dimension_semantics<parallel>], iteration_bounds = array<i64: 2, 1>, scalar_prefetch = 1 : i64, scratch_operands = 1 : i64, tpu.core_type = #tpu.core_type<tc>, window_params = [{}, {}]} {
    %c4_i32 = arith.constant 4 : i32
    %0 = arith.muli %arg1, %c4_i32 : i32
    %c0_i32 = arith.constant 0 : i32
    %1 = arith.addi %0, %c0_i32 : i32
    %c4_i32_0 = arith.constant 4 : i32
    %2 = arith.muli %arg0, %c4_i32_0 : i32
    %3 = arith.index_cast %1 : i32 to index
    %4 = memref.load %arg2[%3] : memref<4xi32, #tpu.memory_space<smem>>
    %5 = arith.addi %2, %4 : i32
    %c4_i32_1 = arith.constant 4 : i32
    %6 = arith.muli %arg0, %c4_i32_1 : i32
    %7 = arith.addi %6, %1 : i32
    %c0_i32_2 = arith.constant 0 : i32
    %c0_i32_3 = arith.constant 0 : i32
    %c0_i32_4 = arith.constant 0 : i32
    %8 = tpu.memref_slice %arg3[%5, %c0_i32_3, %c0_i32_4] : memref<8x2x128xf32, #tpu.memory_space<any>> -> memref<1x2x128xf32, #tpu.memory_space<any>>
    %9 = tpu.memref_squeeze %8 : memref<1x2x128xf32, #tpu.memory_space<any>> -> memref<2x128xf32, #tpu.memory_space<any>>
    %c0_i32_5 = arith.constant 0 : i32
    %c0_i32_6 = arith.constant 0 : i32
    %10 = tpu.memref_slice %arg4[%7, %c0_i32_5, %c0_i32_6] : memref<8x2x128xf32, #tpu.memory_space<any>> -> memref<1x2x128xf32, #tpu.memory_space<any>>
    %11 = tpu.memref_squeeze %10 : memref<1x2x128xf32, #tpu.memory_space<any>> -> memref<2x128xf32, #tpu.memory_space<any>>
    %12 = tpu.memref_slice %arg5[%c0_i32_2] : memref<4x!tpu.dma_semaphore, #tpu.memory_space<semaphore_mem>> -> memref<1x!tpu.dma_semaphore, #tpu.memory_space<semaphore_mem>>
    %13 = tpu.memref_squeeze %12 : memref<1x!tpu.dma_semaphore, #tpu.memory_space<semaphore_mem>> -> memref<!tpu.dma_semaphore, #tpu.memory_space<semaphore_mem>>
    tpu.enqueue_dma source(%9 : memref<2x128xf32, #tpu.memory_space<any>>) target(%11 : memref<2x128xf32, #tpu.memory_space<any>>) target_semaphore(%13 : memref<!tpu.dma_semaphore, #tpu.memory_space<semaphore_mem>>)
    %c1_i32 = arith.constant 1 : i32
    %14 = arith.addi %0, %c1_i32 : i32
    %c4_i32_7 = arith.constant 4 : i32
    %15 = arith.muli %arg0, %c4_i32_7 : i32
    %16 = arith.index_cast %14 : i32 to index
    %17 = memref.load %arg2[%16] : memref<4xi32, #tpu.memory_space<smem>>
    %18 = arith.addi %15, %17 : i32
    %c4_i32_8 = arith.constant 4 : i32
    %19 = arith.muli %arg0, %c4_i32_8 : i32
    %20 = arith.addi %19, %14 : i32
    %c1_i32_9 = arith.constant 1 : i32
    %c0_i32_10 = arith.constant 0 : i32
    %c0_i32_11 = arith.constant 0 : i32
    %21 = tpu.memref_slice %arg3[%18, %c0_i32_10, %c0_i32_11] : memref<8x2x128xf32, #tpu.memory_space<any>> -> memref<1x2x128xf32, #tpu.memory_space<any>>
    %22 = tpu.memref_squeeze %21 : memref<1x2x128xf32, #tpu.memory_space<any>> -> memref<2x128xf32, #tpu.memory_space<any>>
    %c0_i32_12 = arith.constant 0 : i32
    %c0_i32_13 = arith.constant 0 : i32
    %23 = tpu.memref_slice %arg4[%20, %c0_i32_12, %c0_i32_13] : memref<8x2x128xf32, #tpu.memory_space<any>> -> memref<1x2x128xf32, #tpu.memory_space<any>>
    %24 = tpu.memref_squeeze %23 : memref<1x2x128xf32, #tpu.memory_space<any>> -> memref<2x128xf32, #tpu.memory_space<any>>
    %25 = tpu.memref_slice %arg5[%c1_i32_9] : memref<4x!tpu.dma_semaphore, #tpu.memory_space<semaphore_mem>> -> memref<1x!tpu.dma_semaphore, #tpu.memory_space<semaphore_mem>>
    %26 = tpu.memref_squeeze %25 : memref<1x!tpu.dma_semaphore, #tpu.memory_space<semaphore_mem>> -> memref<!tpu.dma_semaphore, #tpu.memory_space<semaphore_mem>>
    tpu.enqueue_dma source(%22 : memref<2x128xf32, #tpu.memory_space<any>>) target(%24 : memref<2x128xf32, #tpu.memory_space<any>>) target_semaphore(%26 : memref<!tpu.dma_semaphore, #tpu.memory_space<semaphore_mem>>)
    %c2_i32 = arith.constant 2 : i32
    %27 = arith.addi %0, %c2_i32 : i32
    %c4_i32_14 = arith.constant 4 : i32
    %28 = arith.muli %arg0, %c4_i32_14 : i32
    %29 = arith.index_cast %27 : i32 to index
    %30 = memref.load %arg2[%29] : memref<4xi32, #tpu.memory_space<smem>>
    %31 = arith.addi %28, %30 : i32
    %c4_i32_15 = arith.constant 4 : i32
    %32 = arith.muli %arg0, %c4_i32_15 : i32
    %33 = arith.addi %32, %27 : i32
    %c2_i32_16 = arith.constant 2 : i32
    %c0_i32_17 = arith.constant 0 : i32
    %c0_i32_18 = arith.constant 0 : i32
    %34 = tpu.memref_slice %arg3[%31, %c0_i32_17, %c0_i32_18] : memref<8x2x128xf32, #tpu.memory_space<any>> -> memref<1x2x128xf32, #tpu.memory_space<any>>
    %35 = tpu.memref_squeeze %34 : memref<1x2x128xf32, #tpu.memory_space<any>> -> memref<2x128xf32, #tpu.memory_space<any>>
    %c0_i32_19 = arith.constant 0 : i32
    %c0_i32_20 = arith.constant 0 : i32
    %36 = tpu.memref_slice %arg4[%33, %c0_i32_19, %c0_i32_20] : memref<8x2x128xf32, #tpu.memory_space<any>> -> memref<1x2x128xf32, #tpu.memory_space<any>>
    %37 = tpu.memref_squeeze %36 : memref<1x2x128xf32, #tpu.memory_space<any>> -> memref<2x128xf32, #tpu.memory_space<any>>
    %38 = tpu.memref_slice %arg5[%c2_i32_16] : memref<4x!tpu.dma_semaphore, #tpu.memory_space<semaphore_mem>> -> memref<1x!tpu.dma_semaphore, #tpu.memory_space<semaphore_mem>>
    %39 = tpu.memref_squeeze %38 : memref<1x!tpu.dma_semaphore, #tpu.memory_space<semaphore_mem>> -> memref<!tpu.dma_semaphore, #tpu.memory_space<semaphore_mem>>
    tpu.enqueue_dma source(%35 : memref<2x128xf32, #tpu.memory_space<any>>) target(%37 : memref<2x128xf32, #tpu.memory_space<any>>) target_semaphore(%39 : memref<!tpu.dma_semaphore, #tpu.memory_space<semaphore_mem>>)
    %c3_i32 = arith.constant 3 : i32
    %40 = arith.addi %0, %c3_i32 : i32
    %c4_i32_21 = arith.constant 4 : i32
    %41 = arith.muli %arg0, %c4_i32_21 : i32
    %42 = arith.index_cast %40 : i32 to index
    %43 = memref.load %arg2[%42] : memref<4xi32, #tpu.memory_space<smem>>
    %44 = arith.addi %41, %43 : i32
    %c4_i32_22 = arith.constant 4 : i32
    %45 = arith.muli %arg0, %c4_i32_22 : i32
    %46 = arith.addi %45, %40 : i32
    %c3_i32_23 = arith.constant 3 : i32
    %c0_i32_24 = arith.constant 0 : i32
    %c0_i32_25 = arith.constant 0 : i32
    %47 = tpu.memref_slice %arg3[%44, %c0_i32_24, %c0_i32_25] : memref<8x2x128xf32, #tpu.memory_space<any>> -> memref<1x2x128xf32, #tpu.memory_space<any>>
    %48 = tpu.memref_squeeze %47 : memref<1x2x128xf32, #tpu.memory_space<any>> -> memref<2x128xf32, #tpu.memory_space<any>>
    %c0_i32_26 = arith.constant 0 : i32
    %c0_i32_27 = arith.constant 0 : i32
    %49 = tpu.memref_slice %arg4[%46, %c0_i32_26, %c0_i32_27] : memref<8x2x128xf32, #tpu.memory_space<any>> -> memref<1x2x128xf32, #tpu.memory_space<any>>
    %50 = tpu.memref_squeeze %49 : memref<1x2x128xf32, #tpu.memory_space<any>> -> memref<2x128xf32, #tpu.memory_space<any>>
    %51 = tpu.memref_slice %arg5[%c3_i32_23] : memref<4x!tpu.dma_semaphore, #tpu.memory_space<semaphore_mem>> -> memref<1x!tpu.dma_semaphore, #tpu.memory_space<semaphore_mem>>
    %52 = tpu.memref_squeeze %51 : memref<1x!tpu.dma_semaphore, #tpu.memory_space<semaphore_mem>> -> memref<!tpu.dma_semaphore, #tpu.memory_space<semaphore_mem>>
    tpu.enqueue_dma source(%48 : memref<2x128xf32, #tpu.memory_space<any>>) target(%50 : memref<2x128xf32, #tpu.memory_space<any>>) target_semaphore(%52 : memref<!tpu.dma_semaphore, #tpu.memory_space<semaphore_mem>>)
    %c0_i32_28 = arith.constant 0 : i32
    %c0_i32_29 = arith.constant 0 : i32
    %c0_i32_30 = arith.constant 0 : i32
    %53 = tpu.memref_slice %arg3[%5, %c0_i32_29, %c0_i32_30] : memref<8x2x128xf32, #tpu.memory_space<any>> -> memref<1x2x128xf32, #tpu.memory_space<any>>
    %54 = tpu.memref_squeeze %53 : memref<1x2x128xf32, #tpu.memory_space<any>> -> memref<2x128xf32, #tpu.memory_space<any>>
    %c0_i32_31 = arith.constant 0 : i32
    %c0_i32_32 = arith.constant 0 : i32
    %55 = tpu.memref_slice %arg4[%7, %c0_i32_31, %c0_i32_32] : memref<8x2x128xf32, #tpu.memory_space<any>> -> memref<1x2x128xf32, #tpu.memory_space<any>>
    %56 = tpu.memref_squeeze %55 : memref<1x2x128xf32, #tpu.memory_space<any>> -> memref<2x128xf32, #tpu.memory_space<any>>
    %57 = tpu.memref_slice %arg5[%c0_i32_28] : memref<4x!tpu.dma_semaphore, #tpu.memory_space<semaphore_mem>> -> memref<1x!tpu.dma_semaphore, #tpu.memory_space<semaphore_mem>>
    %58 = tpu.memref_squeeze %57 : memref<1x!tpu.dma_semaphore, #tpu.memory_space<semaphore_mem>> -> memref<!tpu.dma_semaphore, #tpu.memory_space<semaphore_mem>>
    tpu.wait_dma2 semaphore(%58 : memref<!tpu.dma_semaphore, #tpu.memory_space<semaphore_mem>>) src(%54 : memref<2x128xf32, #tpu.memory_space<any>>) dst(%56 : memref<2x128xf32, #tpu.memory_space<any>>)
    %c1_i32_33 = arith.constant 1 : i32
    %c0_i32_34 = arith.constant 0 : i32
    %c0_i32_35 = arith.constant 0 : i32
    %59 = tpu.memref_slice %arg3[%18, %c0_i32_34, %c0_i32_35] : memref<8x2x128xf32, #tpu.memory_space<any>> -> memref<1x2x128xf32, #tpu.memory_space<any>>
    %60 = tpu.memref_squeeze %59 : memref<1x2x128xf32, #tpu.memory_space<any>> -> memref<2x128xf32, #tpu.memory_space<any>>
    %c0_i32_36 = arith.constant 0 : i32
    %c0_i32_37 = arith.constant 0 : i32
    %61 = tpu.memref_slice %arg4[%20, %c0_i32_36, %c0_i32_37] : memref<8x2x128xf32, #tpu.memory_space<any>> -> memref<1x2x128xf32, #tpu.memory_space<any>>
    %62 = tpu.memref_squeeze %61 : memref<1x2x128xf32, #tpu.memory_space<any>> -> memref<2x128xf32, #tpu.memory_space<any>>
    %63 = tpu.memref_slice %arg5[%c1_i32_33] : memref<4x!tpu.dma_semaphore, #tpu.memory_space<semaphore_mem>> -> memref<1x!tpu.dma_semaphore, #tpu.memory_space<semaphore_mem>>
    %64 = tpu.memref_squeeze %63 : memref<1x!tpu.dma_semaphore, #tpu.memory_space<semaphore_mem>> -> memref<!tpu.dma_semaphore, #tpu.memory_space<semaphore_mem>>
    tpu.wait_dma2 semaphore(%64 : memref<!tpu.dma_semaphore, #tpu.memory_space<semaphore_mem>>) src(%60 : memref<2x128xf32, #tpu.memory_space<any>>) dst(%62 : memref<2x128xf32, #tpu.memory_space<any>>)
    %c2_i32_38 = arith.constant 2 : i32
    %c0_i32_39 = arith.constant 0 : i32
    %c0_i32_40 = arith.constant 0 : i32
    %65 = tpu.memref_slice %arg3[%31, %c0_i32_39, %c0_i32_40] : memref<8x2x128xf32, #tpu.memory_space<any>> -> memref<1x2x128xf32, #tpu.memory_space<any>>
    %66 = tpu.memref_squeeze %65 : memref<1x2x128xf32, #tpu.memory_space<any>> -> memref<2x128xf32, #tpu.memory_space<any>>
    %c0_i32_41 = arith.constant 0 : i32
    %c0_i32_42 = arith.constant 0 : i32
    %67 = tpu.memref_slice %arg4[%33, %c0_i32_41, %c0_i32_42] : memref<8x2x128xf32, #tpu.memory_space<any>> -> memref<1x2x128xf32, #tpu.memory_space<any>>
    %68 = tpu.memref_squeeze %67 : memref<1x2x128xf32, #tpu.memory_space<any>> -> memref<2x128xf32, #tpu.memory_space<any>>
    %69 = tpu.memref_slice %arg5[%c2_i32_38] : memref<4x!tpu.dma_semaphore, #tpu.memory_space<semaphore_mem>> -> memref<1x!tpu.dma_semaphore, #tpu.memory_space<semaphore_mem>>
    %70 = tpu.memref_squeeze %69 : memref<1x!tpu.dma_semaphore, #tpu.memory_space<semaphore_mem>> -> memref<!tpu.dma_semaphore, #tpu.memory_space<semaphore_mem>>
    tpu.wait_dma2 semaphore(%70 : memref<!tpu.dma_semaphore, #tpu.memory_space<semaphore_mem>>) src(%66 : memref<2x128xf32, #tpu.memory_space<any>>) dst(%68 : memref<2x128xf32, #tpu.memory_space<any>>)
    %c3_i32_43 = arith.constant 3 : i32
    %c0_i32_44 = arith.constant 0 : i32
    %c0_i32_45 = arith.constant 0 : i32
    %71 = tpu.memref_slice %arg3[%44, %c0_i32_44, %c0_i32_45] : memref<8x2x128xf32, #tpu.memory_space<any>> -> memref<1x2x128xf32, #tpu.memory_space<any>>
    %72 = tpu.memref_squeeze %71 : memref<1x2x128xf32, #tpu.memory_space<any>> -> memref<2x128xf32, #tpu.memory_space<any>>
    %c0_i32_46 = arith.constant 0 : i32
    %c0_i32_47 = arith.constant 0 : i32
    %73 = tpu.memref_slice %arg4[%46, %c0_i32_46, %c0_i32_47] : memref<8x2x128xf32, #tpu.memory_space<any>> -> memref<1x2x128xf32, #tpu.memory_space<any>>
    %74 = tpu.memref_squeeze %73 : memref<1x2x128xf32, #tpu.memory_space<any>> -> memref<2x128xf32, #tpu.memory_space<any>>
    %75 = tpu.memref_slice %arg5[%c3_i32_43] : memref<4x!tpu.dma_semaphore, #tpu.memory_space<semaphore_mem>> -> memref<1x!tpu.dma_semaphore, #tpu.memory_space<semaphore_mem>>
    %76 = tpu.memref_squeeze %75 : memref<1x!tpu.dma_semaphore, #tpu.memory_space<semaphore_mem>> -> memref<!tpu.dma_semaphore, #tpu.memory_space<semaphore_mem>>
    tpu.wait_dma2 semaphore(%76 : memref<!tpu.dma_semaphore, #tpu.memory_space<semaphore_mem>>) src(%72 : memref<2x128xf32, #tpu.memory_space<any>>) dst(%74 : memref<2x128xf32, #tpu.memory_space<any>>)
    return
  }
}

</mosaic_0001>

<bundles_post_ra>
// kernel: permutation_forward.1
= control target key start
LH: loop header
LB: loop body
LE: loop exit
PB: predicated region body
PF: predicated region fallthrough
CT: control target
= control target key end

     0   :  { %s500_s0 = inlined_call_operand.vmem [shape: s32[4], index: 0, kind: input, shape index: {}]   ;;  %s501_s1 = inlined_call_operand.vmem [shape: f32[8,2,128], index: 1, kind: input, shape index: {}]   ;;  %s502_s2 = inlined_call_operand.vmem [shape: f32[8,2,128], index: 2, kind: output, shape index: {}]  }
   0x1   :  { %s7_s11 = sshll.u32 %s500_s0, 4  ;;  %s8_s11 = int_to_ptr.vmem [resolvable:$true] %s7_s11 }
   0x2   :  { %s412_s12 = scalar_lea.vmem %s8_s11, 16  ;;  %p417_p1 = scmp.lt.s32.totalorder %s8_s11, %s8_s11 }
   0x3   :  { %p413_p0 = scmp.ne.s32.totalorder %s8_s11, %s412_s12  ;;  %p418_p2 = scmp.lt.s32.totalorder %s412_s12, %s412_s12 }
   0x5   :  { %p419_p3 = por %p418_p2, %p417_p1 }
   0x7   :  { %p420_p4 = pnand %p419_p3, %p413_p0 }
   0x9   :  { %423 = shalt.err (!%p420_p4)  }
   0xa   :  { %s450_s13 = smov [#allocation4]  }
   0xb   :  { %10 = dma.vmem_to_smem %s8_s11, 16, %s450_s13, [#allocation3] }
   0xc   :  { %432 = dma.done.wait [#allocation3], 16 }
   0xd   :  { %433 = vsyncadd [#allocation3], 4294967280 }
   0xe   :  { %12 = sfence }
   0xf   :  { %s469_s14 = smov 0   ;;  %s471_s15 = smov 0  }
  0x10 LB: > { %s24_s0 = sadd.s32 1, %s444_s14  ;;  %s30_s16 = sld [smem:[#allocation4]]  ;;  %s448_s15 = sphi %s471_s15, %s18_s15   ;;  %s444_s14 = sphi %s469_s14, %s503_s14  }
  0x11   : > { %p26_p5 = scmp.ge.s32.totalorder %s24_s0, 2  ;;  %s366_s17 = sshll.u32 %s444_s14, 2 }
  0x12   : > { %s391_s18 = sshll.u32 %s444_s14, 3 }
  0x13   : > { %s505_s0 = smov (%p26_p5, %s24_s0), 0  ;;  %s36_s23 = scalar_lea.vmem %s502_s2, %s391_s18 }
  0x16   : > { %s31_s19 = sadd.s32 %s366_s17, %s30_s16 }
  0x17   : > { %s367_s20 = sshll.u32 %s31_s19, 1 }
  0x18   : > { %s34_s26 = scalar_lea.vmem %s501_s1, %s367_s20 }
  0x19   : > { %v54_v0 = vld [vmem:[%s34_s26] sm:$0x3] }
  0x1a   : > { %55 = vst [vmem:[%s36_s23] sm:$0x3] %v54_v0 }
  0x1b   : > { %80 = vsyncadd [#allocation2], 32  ;;  %s369_s27 = sld [smem:[#allocation4 + $0x1]] }
  0x21   : > { %s83_s28 = sadd.s32 %s369_s27, %s366_s17 }
  0x22   : > { %s370_s29 = sshll.u32 %s83_s28, 1 }
  0x23   : > { %s86_s4 = scalar_lea.vmem %s501_s1, %s370_s29 }
  0x24   : > { %v107_v1 = vld [vmem:[%s86_s4] sm:$0x3] }
  0x25   : > { %374 = vst [vmem:[%s36_s23 + $0x2] sm:$0x3] %v107_v1 }
  0x26   : > { %133 = vsyncadd [#allocation2 + $0x1], 32  ;;  %s375_s5 = sld [smem:[#allocation4 + $0x2]] }
  0x2c   : > { %s136_s6 = sadd.s32 %s375_s5, %s366_s17 }
  0x2d   : > { %s376_s7 = sshll.u32 %s136_s6, 1 }
  0x2e   : > { %s139_s10 = scalar_lea.vmem %s501_s1, %s376_s7 }
  0x2f   : > { %v160_v2 = vld [vmem:[%s139_s10] sm:$0x3] }
  0x30   : > { %380 = vst [vmem:[%s36_s23 + $0x4] sm:$0x3] %v160_v2 }
  0x31   : > { %186 = vsyncadd [#allocation2 + $0x2], 32  ;;  %s381_s11 = sld [smem:[#allocation4 + $0x3]] }
  0x37   : > { %s189_s12 = sadd.s32 %s381_s11, %s366_s17 }
  0x38   : > { %s382_s13 = sshll.u32 %s189_s12, 1 }
  0x39   : > { %s192_s18 = scalar_lea.vmem %s501_s1, %s382_s13 }
  0x3a   : > { %v213_v3 = vld [vmem:[%s192_s18] sm:$0x3] }
  0x3b   : > { %386 = vst [vmem:[%s36_s23 + $0x6] sm:$0x3] %v213_v3 }
  0x3c   : > { %239 = vsyncadd [#allocation2 + $0x3], 32 }
  0x3d   : > { %434 = dma.done.wait [#allocation2], 32 }
  0x3e   : > { %435 = vsyncadd [#allocation2], 4294967264 }
  0x3f   : > { %436 = dma.done.wait [#allocation2 + $0x1], 32 }
  0x40   : > { %437 = vsyncadd [#allocation2 + $0x1], 4294967264 }
  0x41   : > { %438 = dma.done.wait [#allocation2 + $0x2], 32 }
  0x42   : > { %439 = vsyncadd [#allocation2 + $0x2], 4294967264 }
  0x43   : > { %440 = dma.done.wait [#allocation2 + $0x3], 32 }
  0x44   : > { %441 = vsyncadd [#allocation2 + $0x3], 4294967264  ;;  %s18_s15 = sadd.s32 1, %s448_s15   ;;  %s503_s14 = smov %s505_s0 }
  0x45   : > { %p15_p6 = scmp.ge.s32.totalorder %s18_s15, 2  }
  0x47   :  { %17 = sbr.rel (!%p15_p6) target bundleno = 16 (0x10), region = 193 }
  0x4e   :  { %249 = vsyncmov [#allocation2] }
  0x51   :  { %s250_s17 = vpop.sfrf %249 }
  0x52   :  { %p387_p7 = scmp.ne.s32.totalorder %s250_s17, 0 }
  0x54   :  { %254 = shalt.err (%p387_p7)  }
  0x55   :  { %256 = vsyncmov [#allocation2 + $0x1] }
  0x58   :  { %s257_s19 = vpop.sfrf %256 }
  0x59   :  { %p388_p8 = scmp.ne.s32.totalorder %s257_s19, 0 }
  0x5b   :  { %261 = shalt.err (%p388_p8)  }
  0x5c   :  { %263 = vsyncmov [#allocation2 + $0x2] }
  0x5f   :  { %s264_s20 = vpop.sfrf %263 }
  0x60   :  { %p389_p9 = scmp.ne.s32.totalorder %s264_s20, 0 }
  0x62   :  { %268 = shalt.err (%p389_p9)  }
  0x63   :  { %270 = vsyncmov [#allocation2 + $0x3] }
  0x66   :  { %s271_s21 = vpop.sfrf %270 }
  0x67   :  { %p390_p10 = scmp.ne.s32.totalorder %s271_s21, 0 }
  0x69   :  { %275 = shalt.err (%p390_p10)  }

</bundles_post_ra>
